<compile_context>
chip_gen: v7x
topology: tpu7x:2x2x1
jax: 0.10.0
libtpu: 0.0.40
codegen_flags: <defaults>
</compile_context>

<pallas_src>
import jax
import jax.numpy as jnp
from jax.experimental import pallas as pl
from jax.experimental.pallas import tpu as pltpu


def _round_up(x, m):
    return (x + m - 1) // m * m


def _choose_tiling(B, sub, max_tile=1024):
    """Pick (tile_b, B_pad): tile_b is a multiple of `sub`, divides B_pad, and
    B_pad >= B with minimal padding.  For batches large enough to split, the
    step count is even so v7x's two TensorCores are balanced."""
    B_sub = _round_up(B, sub)
    if B_sub < 256:                       # too small to split: one step
        return B_sub, B_sub
    if B_sub <= max_tile:                 # two balanced steps (v7x dual-TC)
        tile_b = _round_up(-(-B_sub // 2), sub)
        return tile_b, 2 * tile_b
    n_steps = -(-B_sub // max_tile)       # ceil
    if n_steps % 2:
        n_steps += 1                      # even step count for v7x
    tile_b = _round_up(-(-B_sub // n_steps), sub)
    return tile_b, n_steps * tile_b


def vae_mlp_kernel(x_ref, eps_ref,
                   w1_ref, b1_ref, wh_ref, bh_ref,
                   w3_ref, b3_ref, w4_ref, b4_ref,
                   recon_ref, head_ref):
    latent = eps_ref.shape[-1]

    # encode: h1 = relu(x @ W1 + b1).  Cast x to the matmul dtype in-kernel so
    # the wrapper never does a standalone pass over the largest input.
    x = x_ref[...].astype(w1_ref.dtype)
    h1 = jnp.dot(x, w1_ref[...], preferred_element_type=jnp.float32) + b1_ref[...]
    h1 = jnp.maximum(h1, 0.0)

    # fused mu||logvar head: one matmul, stored at true width (B, 2*latent)
    head = jnp.dot(h1.astype(wh_ref.dtype), wh_ref[...],
                   preferred_element_type=jnp.float32) + bh_ref[...]
    head_ref[...] = head

    mu = head[:, :latent]
    logvar = head[:, latent:]

    # reparameterize: z = eps * exp(0.5 * logvar) + mu   (all f32 on VPU/EUP)
    z = eps_ref[...] * jnp.exp(0.5 * logvar) + mu

    # decode: sigmoid(relu(z @ W3 + b3) @ W4 + b4)
    h3 = jnp.dot(z.astype(w3_ref.dtype), w3_ref[...],
                 preferred_element_type=jnp.float32) + b3_ref[...]
    h3 = jnp.maximum(h3, 0.0)
    logits = jnp.dot(h3.astype(w4_ref.dtype), w4_ref[...],
                     preferred_element_type=jnp.float32) + b4_ref[...]

    # exact sigmoid: exp->+inf for very negative logits, exact 1/(1+inf) -> 0.
    # The VPU divide is free (kernel is DMA-bound) and keeps f32 parity.
    recon = 1.0 / (1.0 + jnp.exp(-logits))
    recon_ref[...] = recon.astype(recon_ref.dtype)


def pack_params(p, compute_dtype=jnp.float32):
    """Fuse the mu/logvar heads and cast matmul weights.  Biases stay f32
    (epilogue math is always f32).  bf16 is a valid fast path on v5e/v6e/v7x."""
    wh = jnp.concatenate([p["w21"], p["w22"]], axis=1)
    bh = jnp.concatenate([p["b21"], p["b22"]], axis=1)
    return dict(
        w1=p["w1"].astype(compute_dtype), b1=p["b1"].astype(jnp.float32),
        wh=wh.astype(compute_dtype),      bh=bh.astype(jnp.float32),
        w3=p["w3"].astype(compute_dtype), b3=p["b3"].astype(jnp.float32),
        w4=p["w4"].astype(compute_dtype), b4=p["b4"].astype(jnp.float32),
    )


def vae_mlp_forward(x_nchw, eps, packed):
    """x_nchw: (B, C, H, W); eps: (B, latent) ~ N(0,1); packed: pack_params output."""
    compute_dtype = packed["w1"].dtype
    img_dim, dense = packed["w1"].shape
    head_w = packed["wh"].shape[1]        # 2 * latent
    latent = eps.shape[1]

    B = x_nchw.shape[0]
    x = x_nchw.reshape(B, img_dim)        # row-major view == torch .view(-1, img_dim)
    eps = eps.astype(jnp.float32)

    sub = 16 if (compute_dtype == jnp.bfloat16 or x.dtype == jnp.bfloat16) else 8
    tile_b, B_pad = _choose_tiling(B, sub)
    if B_pad != B:
        x = jnp.pad(x, ((0, B_pad - B), (0, 0)))
        eps = jnp.pad(eps, ((0, B_pad - B), (0, 0)))

    # batch-tiled activations / outputs; weights resident in VMEM across steps
    # (constant index_map => no re-DMA across grid iterations).
    def act_spec(d):
        return pl.BlockSpec((tile_b, d), lambda b: (b, 0))

    def wgt_spec(shape):
        return pl.BlockSpec(shape, lambda b: (0, 0))

    in_specs = [
        act_spec(img_dim),                        # x
        act_spec(latent),                         # eps
        wgt_spec(packed["w1"].shape), wgt_spec(packed["b1"].shape),
        wgt_spec(packed["wh"].shape), wgt_spec(packed["bh"].shape),
        wgt_spec(packed["w3"].shape), wgt_spec(packed["b3"].shape),
        wgt_spec(packed["w4"].shape), wgt_spec(packed["b4"].shape),
    ]
    out_specs = (
        act_spec(img_dim),                        # recon (compute dtype)
        act_spec(head_w),                         # mu||logvar, true width
    )
    out_shape = (jax.ShapeDtypeStruct((B_pad, img_dim), compute_dtype),
                 jax.ShapeDtypeStruct((B_pad, head_w), jnp.float32))

    flops = 2 * B_pad * (img_dim * dense + dense * head_w
                         + latent * dense + dense * img_dim)
    transcendentals = B_pad * (latent + img_dim)
    bytes_accessed = int(
        x.size * x.dtype.itemsize + eps.size * eps.dtype.itemsize
        + sum(int(v.size) * v.dtype.itemsize for v in packed.values())
        + B_pad * img_dim * jnp.dtype(compute_dtype).itemsize
        + B_pad * head_w * 4)

    recon_p, head_p = pl.pallas_call(
        vae_mlp_kernel,
        grid=(B_pad // tile_b,),
        in_specs=in_specs,
        out_specs=out_specs,
        out_shape=out_shape,
        compiler_params=pltpu.CompilerParams(
            dimension_semantics=("parallel",)),
        cost_estimate=pl.CostEstimate(flops=flops,
                                      transcendentals=transcendentals,
                                      bytes_accessed=bytes_accessed),
    )(x, eps,
      packed["w1"], packed["b1"], packed["wh"], packed["bh"],
      packed["w3"], packed["b3"], packed["w4"], packed["b4"])

    recon = recon_p[:B]
    mu = head_p[:B, :latent]
    logvar = head_p[:B, latent:]
    return recon, mu, logvar


def init_params(key, img_dim, dense_size, latent_dim):
    """Deterministic init. Weights stored as (in, out) = torch Linear weight.T."""
    ks = jax.random.split(key, 10)

    def linear(kw, kb, fan_in, fan_out):
        bound = 1.0 / jnp.sqrt(fan_in)
        w = jax.random.uniform(kw, (fan_in, fan_out), jnp.float32, -bound, bound)
        b = jax.random.uniform(kb, (1, fan_out), jnp.float32, -bound, bound)
        return w, b

    w1, b1 = linear(ks[0], ks[1], img_dim, dense_size)
    w21, b21 = linear(ks[2], ks[3], dense_size, latent_dim)
    w22, b22 = linear(ks[4], ks[5], dense_size, latent_dim)
    w3, b3 = linear(ks[6], ks[7], latent_dim, dense_size)
    w4, b4 = linear(ks[8], ks[9], dense_size, img_dim)
    return dict(w1=w1, b1=b1, w21=w21, b21=b21, w22=w22, b22=b22,
                w3=w3, b3=b3, w4=w4, b4=b4)


def reference_forward(x_nchw, eps, p):
    B = x_nchw.shape[0]
    x = x_nchw.reshape(B, p["w1"].shape[0]).astype(jnp.float32)
    h1 = jax.nn.relu(x @ p["w1"] + p["b1"])
    mu = h1 @ p["w21"] + p["b21"]
    logvar = h1 @ p["w22"] + p["b22"]
    z = eps * jnp.exp(0.5 * logvar) + mu
    h3 = jax.nn.relu(z @ p["w3"] + p["b3"])
    recon = jax.nn.sigmoid(h3 @ p["w4"] + p["b4"])
    return recon, mu, logvar


if __name__ == "__main__":
    # small shapes consistent with the module: img_dim = 1*16*16 = 256
    B, C, H, W = 8, 1, 16, 16
    img_dim = C * H * W          # 256
    dense_size = 128
    latent_dim = 16

    key = jax.random.PRNGKey(0)
    kx, keps, kp = jax.random.split(key, 3)

    x = jax.random.normal(kx, (B, C, H, W), dtype=jnp.float32)
    # eps ~ N(0,1), same shape as std (torch.randn_like(std)); explicit input here
    eps = jax.random.normal(keps, (B, latent_dim), dtype=jnp.float32)
    params = init_params(kp, img_dim, dense_size, latent_dim)

    r_ref, mu_ref, lv_ref = reference_forward(x, eps, params)

    # ---- f32 path (tight correctness check; exact sigmoid) ----
    packed_f32 = pack_params(params, jnp.float32)
    recon, mu, logvar = vae_mlp_forward(x, eps, packed_f32)
    jax.block_until_ready((recon, mu, logvar))

    assert recon.shape == (B, img_dim)
    assert mu.shape == (B, latent_dim) and logvar.shape == (B, latent_dim)
    assert jnp.allclose(mu, mu_ref, atol=1e-5, rtol=1e-5)
    assert jnp.allclose(logvar, lv_ref, atol=1e-5, rtol=1e-5)
    assert jnp.allclose(recon, r_ref, atol=1e-4, rtol=1e-4)

    # ---- bf16 weights/matmuls, f32 epilogue, bf16 recon (fast path, all chips) ----
    packed_bf16 = pack_params(params, jnp.bfloat16)
    recon_h, mu_h, lv_h = vae_mlp_forward(x, eps, packed_bf16)
    jax.block_until_ready((recon_h, mu_h, lv_h))
    assert recon_h.dtype == jnp.bfloat16
    assert jnp.allclose(mu_h, mu_ref, atol=5e-2, rtol=5e-2)
    assert jnp.allclose(lv_h, lv_ref, atol=5e-2, rtol=5e-2)
    assert jnp.allclose(recon_h.astype(jnp.float32), r_ref, atol=5e-2, rtol=5e-2)

    print("KERNEL_OK")
</pallas_src>

<mosaic_0001>
module attributes {stable_mosaic.version = 11 : i64} {
  func.func @vae_mlp_kernel(%arg0: i32, %arg1: memref<8x256xf32, #tpu.memory_space<vmem>>, %arg2: memref<8x16xf32, #tpu.memory_space<vmem>>, %arg3: memref<256x128xf32, #tpu.memory_space<vmem>>, %arg4: memref<1x128xf32, #tpu.memory_space<vmem>>, %arg5: memref<128x32xf32, #tpu.memory_space<vmem>>, %arg6: memref<1x32xf32, #tpu.memory_space<vmem>>, %arg7: memref<16x128xf32, #tpu.memory_space<vmem>>, %arg8: memref<1x128xf32, #tpu.memory_space<vmem>>, %arg9: memref<128x256xf32, #tpu.memory_space<vmem>>, %arg10: memref<1x256xf32, #tpu.memory_space<vmem>>, %arg11: memref<8x256xf32, #tpu.memory_space<vmem>>, %arg12: memref<8x32xf32, #tpu.memory_space<vmem>>) attributes {dimension_semantics = [#tpu.dimension_semantics<parallel>], iteration_bounds = array<i64: 1>, scalar_prefetch = 0 : i64, scratch_operands = 0 : i64, tpu.core_type = #tpu.core_type<tc>, window_params = [{transform_indices = @transform_0, window_bounds = array<i64: 8, 256>}, {transform_indices = @transform_1, window_bounds = array<i64: 8, 16>}, {pipeline_mode = #tpu.pipeline_mode<synchronous>, transform_indices = @transform_2, window_bounds = array<i64: 256, 128>}, {pipeline_mode = #tpu.pipeline_mode<synchronous>, transform_indices = @transform_3, window_bounds = array<i64: 1, 128>}, {pipeline_mode = #tpu.pipeline_mode<synchronous>, transform_indices = @transform_4, window_bounds = array<i64: 128, 32>}, {pipeline_mode = #tpu.pipeline_mode<synchronous>, transform_indices = @transform_5, window_bounds = array<i64: 1, 32>}, {pipeline_mode = #tpu.pipeline_mode<synchronous>, transform_indices = @transform_6, window_bounds = array<i64: 16, 128>}, {pipeline_mode = #tpu.pipeline_mode<synchronous>, transform_indices = @transform_7, window_bounds = array<i64: 1, 128>}, {pipeline_mode = #tpu.pipeline_mode<synchronous>, transform_indices = @transform_8, window_bounds = array<i64: 128, 256>}, {pipeline_mode = #tpu.pipeline_mode<synchronous>, transform_indices = @transform_9, window_bounds = array<i64: 1, 256>}, {transform_indices = @transform_10, window_bounds = array<i64: 8, 256>}, {transform_indices = @transform_11, window_bounds = array<i64: 8, 32>}]} {
    %c0 = arith.constant 0 : index
    %c0_0 = arith.constant 0 : index
    %0 = vector.load %arg1[%c0, %c0_0] : memref<8x256xf32, #tpu.memory_space<vmem>>, vector<8x256xf32>
    %c0_1 = arith.constant 0 : index
    %c0_2 = arith.constant 0 : index
    %1 = vector.load %arg3[%c0_1, %c0_2] : memref<256x128xf32, #tpu.memory_space<vmem>>, vector<256x128xf32>
    %cst = arith.constant dense<0.000000e+00> : vector<8x128xf32>
    %2 = tpu.matmul %0, %1, %cst {dimension_numbers = #tpu.dot_dimension_numbers<[1], [0], [0], [1], [0, 0, 1, 1], [], []>} : vector<8x256xf32>, vector<256x128xf32>, vector<8x128xf32> -> vector<8x128xf32>
    %c0_3 = arith.constant 0 : index
    %c0_4 = arith.constant 0 : index
    %3 = vector.load %arg4[%c0_3, %c0_4] : memref<1x128xf32, #tpu.memory_space<vmem>>, vector<1x128xf32>
    %4 = vector.broadcast %3 : vector<1x128xf32> to vector<8x128xf32>
    %5 = arith.addf %2, %4 : vector<8x128xf32>
    %cst_5 = arith.constant 0.000000e+00 : f32
    %6 = vector.broadcast %cst_5 : f32 to vector<8x128xf32>
    %7 = arith.maximumf %5, %6 : vector<8x128xf32>
    %c0_6 = arith.constant 0 : index
    %c0_7 = arith.constant 0 : index
    %8 = vector.load %arg5[%c0_6, %c0_7] : memref<128x32xf32, #tpu.memory_space<vmem>>, vector<128x32xf32>
    %cst_8 = arith.constant dense<0.000000e+00> : vector<8x32xf32>
    %9 = tpu.matmul %7, %8, %cst_8 {dimension_numbers = #tpu.dot_dimension_numbers<[1], [0], [0], [1], [0, 0, 1, 1], [], []>} : vector<8x128xf32>, vector<128x32xf32>, vector<8x32xf32> -> vector<8x32xf32>
    %c0_9 = arith.constant 0 : index
    %c0_10 = arith.constant 0 : index
    %10 = vector.load %arg6[%c0_9, %c0_10] : memref<1x32xf32, #tpu.memory_space<vmem>>, vector<1x32xf32>
    %11 = vector.broadcast %10 : vector<1x32xf32> to vector<8x32xf32>
    %12 = arith.addf %9, %11 : vector<8x32xf32>
    %c0_11 = arith.constant 0 : index
    %c0_12 = arith.constant 0 : index
    %13 = vector.load %arg12[%c0_11, %c0_12] : memref<8x32xf32, #tpu.memory_space<vmem>>, vector<8x32xf32>
    tpu.vector_store %arg12[%c0_11, %c0_12], %12 {strides = array<i32>} : memref<8x32xf32, #tpu.memory_space<vmem>>, vector<8x32xf32>,
    %14 = vector.extract_strided_slice %12 {offsets = [0, 0], sizes = [8, 16], strides = [1, 1]} : vector<8x32xf32> to vector<8x16xf32>
    %15 = vector.extract_strided_slice %12 {offsets = [0, 16], sizes = [8, 16], strides = [1, 1]} : vector<8x32xf32> to vector<8x16xf32>
    %c0_13 = arith.constant 0 : index
    %c0_14 = arith.constant 0 : index
    %16 = vector.load %arg2[%c0_13, %c0_14] : memref<8x16xf32, #tpu.memory_space<vmem>>, vector<8x16xf32>
    %cst_15 = arith.constant 5.000000e-01 : f32
    %17 = vector.broadcast %cst_15 : f32 to vector<8x16xf32>
    %18 = arith.mulf %17, %15 : vector<8x16xf32>
    %19 = math.exp %18 : vector<8x16xf32>
    %20 = arith.mulf %16, %19 : vector<8x16xf32>
    %21 = arith.addf %20, %14 : vector<8x16xf32>
    %c0_16 = arith.constant 0 : index
    %c0_17 = arith.constant 0 : index
    %22 = vector.load %arg7[%c0_16, %c0_17] : memref<16x128xf32, #tpu.memory_space<vmem>>, vector<16x128xf32>
    %cst_18 = arith.constant dense<0.000000e+00> : vector<8x128xf32>
    %23 = tpu.matmul %21, %22, %cst_18 {dimension_numbers = #tpu.dot_dimension_numbers<[1], [0], [0], [1], [0, 0, 1, 1], [], []>} : vector<8x16xf32>, vector<16x128xf32>, vector<8x128xf32> -> vector<8x128xf32>
    %c0_19 = arith.constant 0 : index
    %c0_20 = arith.constant 0 : index
    %24 = vector.load %arg8[%c0_19, %c0_20] : memref<1x128xf32, #tpu.memory_space<vmem>>, vector<1x128xf32>
    %25 = vector.broadcast %24 : vector<1x128xf32> to vector<8x128xf32>
    %26 = arith.addf %23, %25 : vector<8x128xf32>
    %cst_21 = arith.constant 0.000000e+00 : f32
    %27 = vector.broadcast %cst_21 : f32 to vector<8x128xf32>
    %28 = arith.maximumf %26, %27 : vector<8x128xf32>
    %c0_22 = arith.constant 0 : index
    %c0_23 = arith.constant 0 : index
    %29 = vector.load %arg9[%c0_22, %c0_23] : memref<128x256xf32, #tpu.memory_space<vmem>>, vector<128x256xf32>
    %cst_24 = arith.constant dense<0.000000e+00> : vector<8x256xf32>
    %30 = tpu.matmul %28, %29, %cst_24 {dimension_numbers = #tpu.dot_dimension_numbers<[1], [0], [0], [1], [0, 0, 1, 1], [], []>} : vector<8x128xf32>, vector<128x256xf32>, vector<8x256xf32> -> vector<8x256xf32>
    %c0_25 = arith.constant 0 : index
    %c0_26 = arith.constant 0 : index
    %31 = vector.load %arg10[%c0_25, %c0_26] : memref<1x256xf32, #tpu.memory_space<vmem>>, vector<1x256xf32>
    %32 = vector.broadcast %31 : vector<1x256xf32> to vector<8x256xf32>
    %33 = arith.addf %30, %32 : vector<8x256xf32>
    %cst_27 = arith.constant 0.000000e+00 : f32
    %34 = vector.broadcast %cst_27 : f32 to vector<8x256xf32>
    %35 = arith.subf %34, %33 : vector<8x256xf32>
    %36 = math.exp %35 : vector<8x256xf32>
    %cst_28 = arith.constant 1.000000e+00 : f32
    %37 = vector.broadcast %cst_28 : f32 to vector<8x256xf32>
    %38 = arith.addf %37, %36 : vector<8x256xf32>
    %cst_29 = arith.constant 1.000000e+00 : f32
    %39 = vector.broadcast %cst_29 : f32 to vector<8x256xf32>
    %40 = arith.divf %39, %38 : vector<8x256xf32>
    %c0_30 = arith.constant 0 : index
    %c0_31 = arith.constant 0 : index
    %41 = vector.load %arg11[%c0_30, %c0_31] : memref<8x256xf32, #tpu.memory_space<vmem>>, vector<8x256xf32>
    tpu.vector_store %arg11[%c0_30, %c0_31], %40 {strides = array<i32>} : memref<8x256xf32, #tpu.memory_space<vmem>>, vector<8x256xf32>,
    return
  }
  func.func @transform_0(%arg0: i32) -> (i32, i32) {
    %c0_i32 = arith.constant 0 : i32
    %c0_i32_0 = arith.constant 0 : i32
    return %arg0, %c0_i32 : i32, i32
  }
  func.func @transform_1(%arg0: i32) -> (i32, i32) {
    %c0_i32 = arith.constant 0 : i32
    %c0_i32_0 = arith.constant 0 : i32
    return %arg0, %c0_i32 : i32, i32
  }
  func.func @transform_2(%arg0: i32) -> (i32, i32) {
    %c0_i32 = arith.constant 0 : i32
    %c0_i32_0 = arith.constant 0 : i32
    %c0_i32_1 = arith.constant 0 : i32
    return %c0_i32, %c0_i32_0 : i32, i32
  }
  func.func @transform_3(%arg0: i32) -> (i32, i32) {
    %c0_i32 = arith.constant 0 : i32
    %c0_i32_0 = arith.constant 0 : i32
    %c0_i32_1 = arith.constant 0 : i32
    return %c0_i32, %c0_i32_0 : i32, i32
  }
  func.func @transform_4(%arg0: i32) -> (i32, i32) {
    %c0_i32 = arith.constant 0 : i32
    %c0_i32_0 = arith.constant 0 : i32
    %c0_i32_1 = arith.constant 0 : i32
    return %c0_i32, %c0_i32_0 : i32, i32
  }
  func.func @transform_5(%arg0: i32) -> (i32, i32) {
    %c0_i32 = arith.constant 0 : i32
    %c0_i32_0 = arith.constant 0 : i32
    %c0_i32_1 = arith.constant 0 : i32
    return %c0_i32, %c0_i32_0 : i32, i32
  }
  func.func @transform_6(%arg0: i32) -> (i32, i32) {
    %c0_i32 = arith.constant 0 : i32
    %c0_i32_0 = arith.constant 0 : i32
    %c0_i32_1 = arith.constant 0 : i32
    return %c0_i32, %c0_i32_0 : i32, i32
  }
  func.func @transform_7(%arg0: i32) -> (i32, i32) {
    %c0_i32 = arith.constant 0 : i32
    %c0_i32_0 = arith.constant 0 : i32
    %c0_i32_1 = arith.constant 0 : i32
    return %c0_i32, %c0_i32_0 : i32, i32
  }
  func.func @transform_8(%arg0: i32) -> (i32, i32) {
    %c0_i32 = arith.constant 0 : i32
    %c0_i32_0 = arith.constant 0 : i32
    %c0_i32_1 = arith.constant 0 : i32
    return %c0_i32, %c0_i32_0 : i32, i32
  }
  func.func @transform_9(%arg0: i32) -> (i32, i32) {
    %c0_i32 = arith.constant 0 : i32
    %c0_i32_0 = arith.constant 0 : i32
    %c0_i32_1 = arith.constant 0 : i32
    return %c0_i32, %c0_i32_0 : i32, i32
  }
  func.func @transform_10(%arg0: i32) -> (i32, i32) {
    %c0_i32 = arith.constant 0 : i32
    %c0_i32_0 = arith.constant 0 : i32
    return %arg0, %c0_i32 : i32, i32
  }
  func.func @transform_11(%arg0: i32) -> (i32, i32) {
    %c0_i32 = arith.constant 0 : i32
    %c0_i32_0 = arith.constant 0 : i32
    return %arg0, %c0_i32 : i32, i32
  }
}

</mosaic_0001>

<bundles_post_ra>
// kernel: tpu_custom_call.1
= control target key start
LH: loop header
LB: loop body
LE: loop exit
PB: predicated region body
PF: predicated region fallthrough
CT: control target
= control target key end

     0   :  { %17 = vsyncpa [#allocation3], 0  ;;  %s1046_s0 = inlined_call_operand.vmem [shape: f32[8,256], index: 0, kind: input, shape index: {}]   ;;  %s1047_s1 = inlined_call_operand.vmem [shape: f32[8,16], index: 1, kind: input, shape index: {}]   ;;  %s1048_s2 = inlined_call_operand.hbm [shape: f32[256,128], index: 2, kind: input, shape index: {}]   ;;  %s1049_s3 = inlined_call_operand.vmem [shape: f32[1,128], index: 3, kind: input, shape index: {}]   ;;  %s1050_s4 = inlined_call_operand.vmem [shape: f32[128,32], index: 4, kind: input, shape index: {}]   ;;  %s1051_s5 = inlined_call_operand.vmem [shape: f32[1,32], index: 5, kind: input, shape index: {}]   ;;  %s1052_s6 = inlined_call_operand.vmem [shape: f32[16,128], index: 6, kind: input, shape index: {}]   ;;  %s1053_s7 = inlined_call_operand.vmem [shape: f32[1,128], index: 7, kind: input, shape index: {}]   ;;  %s1054_s8 = inlined_call_operand.hbm [shape: f32[128,256], index: 8, kind: input, shape index: {}]   ;;  %s1055_s9 = inlined_call_operand.vmem [shape: f32[1,256], index: 9, kind: input, shape index: {}]   ;;  %s1056_s10 = inlined_call_operand.hbm [shape: f32[8,256], index: 10, kind: output, shape index: {0}]   ;;  %s1057_s11 = inlined_call_operand.hbm [shape: f32[8,32], index: 11, kind: output, shape index: {1}]  }
   0x1   :  { %18 = vsyncpa [#allocation6], 0 }
   0x2   :  { %19 = vsyncpa [#allocation4], 0 }
   0x3   :  { %20 = vsyncpa [#allocation9], 0  ;;  %s837_s17 = smov [#allocation2]   ;;  %s741_s21 = scalar_lea.hbm %s1048_s2, 4096 }
   0x4   :  { %s30_s18 = sshll.u32 %s837_s17, 4  ;;  %p742_p0 = scmp.ne.s32.totalorder %s1048_s2, %s741_s21  ;;  %s31_s18 = int_to_ptr.vmem [resolvable:$true] %s30_s18 }
   0x5   :  { %p745_p1 = scmp.lt.u32.totalorder %s741_s21, %s1048_s2 }
   0x7   :  { %p747_p2 = pnand %p745_p1, %p742_p0 }
   0x9   :  { %750 = shalt.err (!%p747_p2)
}
   0xa   :  { %s751_s26 = scalar_lea.vmem %s31_s18, 4096  ;;  %p756_p4 = scmp.lt.s32.totalorder %s31_s18, %s31_s18 }
   0xb   :  { %p752_p3 = scmp.ne.s32.totalorder %s31_s18, %s751_s26  ;;  %p757_p5 = scmp.lt.s32.totalorder %s751_s26, %s751_s26 }
   0xd   :  { %p758_p6 = por %p757_p5, %p756_p4 }
   0xf   :  { %p759_p7 = pnand %p758_p6, %p752_p3 }
  0x11   :  { %762 = shalt.err (!%p759_p7)
}
  0x12   :  { %s838_s27 = smov 128   ;;  %s839_s28 = smov 8  }
  0x13   :  { %36 = dma.hbm_to_vmem [thread:$0]  %s1048_s2, 4096, %s31_s18, [#allocation3], %s838_s27, %s838_s27, %s839_s28  }
  0x14   :  { %s840_s12 = smov [#allocation5]   ;;  %s763_s16 = scalar_lea.hbm %s1054_s8, 4096 }
  0x15   :  { %s52_s13 = sshll.u32 %s840_s12, 4  ;;  %p764_p8 = scmp.ne.s32.totalorder %s1054_s8, %s763_s16  ;;  %s53_s13 = int_to_ptr.vmem [resolvable:$true] %s52_s13 }
  0x16   :  { %p767_p9 = scmp.lt.u32.totalorder %s763_s16, %s1054_s8 }
  0x18   :  { %p769_p10 = pnand %p767_p9, %p764_p8 }
  0x1a   :  { %772 = shalt.err (!%p769_p10)
}
  0x1b   :  { %s773_s22 = scalar_lea.vmem %s53_s13, 4096  ;;  %p778_p12 = scmp.lt.s32.totalorder %s53_s13, %s53_s13 }
  0x1c   :  { %p774_p11 = scmp.ne.s32.totalorder %s53_s13, %s773_s22  ;;  %p779_p13 = scmp.lt.s32.totalorder %s773_s22, %s773_s22 }
  0x1e   :  { %p780_p0 = por %p779_p13, %p778_p12 }
  0x20   :  { %p781_p1 = pnand %p780_p0, %p774_p11 }
  0x22   :  { %784 = shalt.err (!%p781_p1)
}
  0x23   :  { %s841_s2 = smov 256   ;;  %s842_s18 = smov 16  }
  0x24   :  { %58 = dma.hbm_to_vmem [thread:$0]  %s1054_s8, 4096, %s53_s13, [#allocation6], %s841_s2, %s841_s2, %s842_s18  }
  0x25   :  { %829 = dma.done.wait [#allocation3], 4096  }
  0x26   :  { %830 = vsyncadd [#allocation3], 4294963200 }
  0x27   :  { %831 = dma.done.wait [#allocation6], 4096  }
  0x28   :  { %832 = vsyncadd [#allocation6], 4294963200  ;;  %v843_v0 = vmov 0.0|0.0   ;;  %v85_v1 = vld [vmem:[#allocation2 + $0x80] sm:$0xff]  ;;  %v86_v2 = vld [vmem:[#allocation2 + $0x88] sm:$0xff]  ;;  %vm844_vm0 = vmmov 0  }
  0x29   :  { %660 = vmatprep.subr.bf16.mxu1 %v843_v0  ;;  %v69_v3 = vld [vmem:[#allocation2] sm:$0xff]  ;;  %v628_v4 = vpack.c.bf16 %v86_v2, %v85_v1  ;;  %v70_v5 = vld [vmem:[#allocation2 + $0x8] sm:$0xff]  ;;  %v87_v6 = vld [vmem:[#allocation2 + $0x90] sm:$0xff]  ;;  %vm272_vm1 = vcmask 261120   ;;  %vm293_vm2 = vcmask 130048  }
  0x2a   :  { %v88_v7 = vld [vmem:[#allocation2 + $0x98] sm:$0xff]  ;;  %v630_v8 = vpack.c.bf16 %v70_v5, %v69_v3  ;;  %v71_v10 = vld [vmem:[#allocation2 + $0x10] sm:$0xff]  ;;  %v89_v12 = vld [vmem:[#allocation2 + $0xa0] sm:$0xff] }
  0x2b   :  { %v632_v9 = vpack.c.bf16 %v88_v7, %v87_v6  ;;  %v72_v11 = vld [vmem:[#allocation2 + $0x18] sm:$0xff]  ;;  %629 = vmatprep.subr.bf16.mxu0 %v628_v4  ;;  %v90_v13 = vld [vmem:[#allocation2 + $0xa8] sm:$0xff]  ;;  %v73_v16 = vld [vmem:[#allocation2 + $0x20] sm:$0xff] }
  0x2c   :  { %631 = vmatpush3.bf16.msra.mxu0 %v630_v8  ;;  %v634_v14 = vpack.c.bf16 %v72_v11, %v71_v10  ;;  %v636_v15 = vpack.c.bf16 %v90_v13, %v89_v12  ;;  %v74_v17 = vld [vmem:[#allocation2 + $0x28] sm:$0xff]  ;;  %v91_v18 = vld [vmem:[#allocation2 + $0xb0] sm:$0xff]  ;;  %v92_v19 = vld [vmem:[#allocation2 + $0xb8] sm:$0xff]  ;;  %v845_v12 = vmov 0.0  }
  0x2d   :  { %633 = vmatprep.subr.bf16.mxu0 %v632_v9  ;;  %v638_v20 = vpack.c.bf16 %v74_v17, %v73_v16  ;;  %v640_v21 = vpack.c.bf16 %v92_v19, %v91_v18  ;;  %v75_v22 = vld [vmem:[#allocation2 + $0x30] sm:$0xff]  ;;  %v76_v23 = vld [vmem:[#allocation2 + $0x38] sm:$0xff]  ;;  %v93_v24 = vld [vmem:[#allocation2 + $0xc0] sm:$0xff]  ;;  %618 = vmatprep.mubr.msk.f32.mxu1 %vm844_vm0, %v845_v12 }
  0x2e   :  { %v94_v25 = vld [vmem:[#allocation2 + $0xc8] sm:$0xff]  ;;  %v179_v27 = vld [vmem:[%s1050_s4] sm:$0xff]  ;;  %v642_v29 = vpack.c.bf16 %v76_v23, %v75_v22  ;;  %v181_v31 = vld [vmem:[%s1050_s4 + $0x10] sm:$0xff] }
  0x2f   :  { %v68_v26 = vld [vmem:[%s1046_s0 + $0x8] sm:$0xff]  ;;  %v182_v32 = vld [vmem:[%s1050_s4 + $0x18] sm:$0xff]  ;;  %v644_v33 = vpack.c.bf16 %v94_v25, %v93_v24  ;;  %v77_v34 = vld [vmem:[#allocation2 + $0x40] sm:$0xff] }
  0x30   :  { %635 = vmatpush3.bf16.msra.mxu0 %v634_v14  ;;  %172 = vmatprep.mubr.f32.mxu0 %v68_v26  ;;  %v180_v28 = vld [vmem:[%s1050_s4 + $0x8] sm:$0xff]  ;;  %v95_v36 = vld [vmem:[#allocation2 + $0xd0] sm:$0xff]  ;;  %v96_v37 = vld [vmem:[#allocation2 + $0xd8] sm:$0xff]  ;;  %v664_v38 = vpack.c.bf16 %v182_v32, %v181_v31 }
  0x31   :  { %637 = vmatprep.subr.bf16.mxu0 %v636_v15  ;;  %v661_v30 = vpack.c.bf16 %v180_v28, %v179_v27  ;;  %v78_v35 = vld [vmem:[#allocation2 + $0x48] sm:$0xff]  ;;  %v183_v39 = vld [vmem:[%s1050_s4 + $0x20] sm:$0xff]  ;;  %v648_v42 = vpack.c.bf16 %v96_v37, %v95_v36  ;;  %v79_v43 = vld [vmem:[#allocation2 + $0x50] sm:$0xff] }
  0x32   :  { %v184_v40 = vld [vmem:[%s1050_s4 + $0x28] sm:$0xff]  ;;  %v646_v41 = vpack.c.bf16 %v78_v35, %v77_v34  ;;  %v80_v44 = vld [vmem:[#allocation2 + $0x58] sm:$0xff]  ;;  %v97_v45 = vld [vmem:[#allocation2 + $0xe0] sm:$0xff] }
  0x33   :  { %662 = vmatpush3.bf16.msra.mxu1 %v661_v30  ;;  %v98_v46 = vld [vmem:[#allocation2 + $0xe8] sm:$0xff]  ;;  %v667_v47 = vpack.c.bf16 %v184_v40, %v183_v39  ;;  %v185_v48 = vld [vmem:[%s1050_s4 + $0x30] sm:$0xff]  ;;  %v186_v49 = vld [vmem:[%s1050_s4 + $0x38] sm:$0xff]  ;;  %v650_v50 = vpack.c.bf16 %v80_v44, %v79_v43 }
  0x34   :  { %639 = vmatpush3.bf16.msra.mxu0 %v638_v20  ;;  %663 = vmatprep.subr.bf16.mxu1 %v843_v0  ;;  %v652_v51 = vpack.c.bf16 %v98_v46, %v97_v45  ;;  %v81_v52 = vld [vmem:[#allocation2 + $0x60] sm:$0xff]  ;;  %v82_v53 = vld [vmem:[#allocation2 + $0x68] sm:$0xff]  ;;  %v99_v54 = vld [vmem:[#allocation2 + $0xf0] sm:$0xff]  ;;  %v670_v56 = vpack.c.bf16 %v186_v49, %v185_v48 }
  0x35   :  { %641 = vmatprep.subr.bf16.mxu0 %v640_v21  ;;  %v100_v55 = vld [vmem:[#allocation2 + $0xf8] sm:$0xff]  ;;  %v187_v57 = vld [vmem:[%s1050_s4 + $0x40] sm:$0xff]  ;;  %v188_v58 = vld [vmem:[%s1050_s4 + $0x48] sm:$0xff]  ;;  %v654_v59 = vpack.c.bf16 %v82_v53, %v81_v52 }
  0x36   :  { %v656_v60 = vpack.c.bf16 %v100_v55, %v99_v54  ;;  %v83_v61 = vld [vmem:[#allocation2 + $0x70] sm:$0xff]  ;;  %v84_v62 = vld [vmem:[#allocation2 + $0x78] sm:$0xff]  ;;  %v673_v63 = vpack.c.bf16 %v188_v58, %v187_v57  ;;  %v67_v5 = vld [vmem:[%s1046_s0] sm:$0xff] }
  0x37   :  { %665 = vmatpush3.bf16.msra.mxu1 %v664_v38  ;;  %v189_v1 = vld [vmem:[%s1050_s4 + $0x50] sm:$0xff]  ;;  %v190_v2 = vld [vmem:[%s1050_s4 + $0x58] sm:$0xff]  ;;  %v658_v3 = vpack.c.bf16 %v84_v62, %v83_v61  ;;  %v191_v6 = vld [vmem:[%s1050_s4 + $0x60] sm:$0xff] }
  0x38   :  { %643 = vmatpush3.bf16.msra.mxu0 %v642_v29  ;;  %666 = vmatprep.subr.bf16.mxu1 %v843_v0  ;;  %v676_v4 = vpack.c.bf16 %v190_v2, %v189_v1  ;;  %v192_v7 = vld [vmem:[%s1050_s4 + $0x68] sm:$0xff]  ;;  %v193_v9 = vld [vmem:[%s1050_s4 + $0x70] sm:$0xff]  ;;  %v194_v10 = vld [vmem:[%s1050_s4 + $0x78] sm:$0xff] }
  0x39   :  { %645 = vmatprep.subr.bf16.mxu0 %v644_v33  ;;  %v679_v8 = vpack.c.bf16 %v192_v7, %v191_v6  ;;  %v682_v11 = vpack.c.bf16 %v194_v10, %v193_v9  ;;  %v527_v14 = vld [vmem:[%s1049_s3] ss:$0 sm:$0xff]  ;;  %v285_v24 = vld [vmem:[%s1052_s6 + $0x8] sm:$0xff]  ;;  %v371_v28 = vld [vmem:[#allocation5 + $0x18] sm:$0xff] }
  0x3a   :  { %v528_v18 = vld [vmem:[%s1051_s5] ss:$0 sm:$0xff]  ;;  %v369_v27 = vld [vmem:[#allocation5 + $0x8] sm:$0xff]  ;;  %v370_v31 = vld [vmem:[#allocation5 + $0x10] sm:$0xff]  ;;  %s846_s5 = smov 112  }
  0x3b   :  { %668 = vmatpush3.bf16.msra.mxu1 %v667_v47  ;;  %v284_v23 = vld [vmem:[%s1052_s6] sm:$0xff]  ;;  %v687_v30 = vpack.c.bf16 %v371_v28, %v369_v27  ;;  %v373_v32 = vld [vmem:[#allocation5 + $0x28] sm:$0xff]  ;;  %v375_v33 = vld [vmem:[#allocation5 + $0x38] sm:$0xff] }
  0x3c   :  { %647 = vmatpush3.bf16.msra.mxu0 %v646_v41  ;;  %669 = vmatprep.subr.bf16.mxu1 %v843_v0  ;;  %v685_v25 = vpack.c.bf16 %v285_v24, %v284_v23  ;;  %v368_v29 = vld [vmem:[#allocation5] sm:$0xff]  ;;  %v691_v35 = vpack.c.bf16 %v375_v33, %v373_v32  ;;  %v374_v37 = vld [vmem:[#allocation5 + $0x30] sm:$0xff]  ;;  %v377_v38 = vld [vmem:[#allocation5 + $0x48] sm:$0xff] }
  0x3d   :  { %649 = vmatprep.subr.bf16.mxu0 %v648_v42  ;;  %v689_v34 = vpack.c.bf16 %v370_v31, %v368_v29  ;;  %v372_v36 = vld [vmem:[#allocation5 + $0x20] sm:$0xff]  ;;  %v379_v39 = vld [vmem:[#allocation5 + $0x58] sm:$0xff]  ;;  %v378_v43 = vld [vmem:[#allocation5 + $0x50] sm:$0xff] }
  0x3e   :  { %v693_v40 = vpack.c.bf16 %v374_v37, %v372_v36  ;;  %v695_v41 = vpack.c.bf16 %v379_v39, %v377_v38  ;;  %v376_v42 = vld [vmem:[#allocation5 + $0x40] sm:$0xff]  ;;  %v381_v44 = vld [vmem:[#allocation5 + $0x68] sm:$0xff]  ;;  %v383_v45 = vld [vmem:[#allocation5 + $0x78] sm:$0xff] }
  0x3f   :  { %671 = vmatpush3.bf16.msra.mxu1 %v670_v56  ;;  %v697_v47 = vpack.c.bf16 %v378_v43, %v376_v42  ;;  %v699_v48 = vpack.c.bf16 %v383_v45, %v381_v44  ;;  %v380_v49 = vld [vmem:[#allocation5 + $0x60] sm:$0xff]  ;;  %v387_v52 = vld [vmem:[#allocation5 + $0x98] sm:$0xff]  ;;  %v386_v56 = vld [vmem:[#allocation5 + $0x90] sm:$0xff] }
  0x40   :  { %651 = vmatpush3.bf16.msra.mxu0 %v650_v50  ;;  %672 = vmatprep.subr.bf16.mxu1 %v843_v0  ;;  %v382_v50 = vld [vmem:[#allocation5 + $0x70] sm:$0xff]  ;;  %v384_v55 = vld [vmem:[#allocation5 + $0x80] sm:$0xff]  ;;  %v389_v57 = vld [vmem:[#allocation5 + $0xa8] sm:$0xff] }
  0x41   :  { %653 = vmatprep.subr.bf16.mxu0 %v652_v51  ;;  %v385_v51 = vld [vmem:[#allocation5 + $0x88] sm:$0xff]  ;;  %v701_v53 = vpack.c.bf16 %v382_v50, %v380_v49  ;;  %v391_v58 = vld [vmem:[#allocation5 + $0xb8] sm:$0xff]  ;;  %v388_v61 = vld [vmem:[#allocation5 + $0xa0] sm:$0xff] }
  0x42   :  { %v703_v54 = vpack.c.bf16 %v387_v52, %v385_v51  ;;  %v390_v62 = vld [vmem:[#allocation5 + $0xb0] sm:$0xff]  ;;  %v395_v1 = vld [vmem:[#allocation5 + $0xd8] sm:$0xff]  ;;  %v274_v7 = vld [vmem:[%s1047_s1] sm:$0xff]  ;;  %s847_s1 = smov [#allocation8]  }
  0x43   :  { %674 = vmatpush3.bf16.msra.mxu1 %v673_v63  ;;  %v393_v63 = vld [vmem:[#allocation5 + $0xc8] sm:$0xff]  ;;  %v709_v2 = vpack.c.bf16 %v390_v62, %v388_v61  ;;  %s513_s26 = sshll.u32 %s847_s1, 4  ;;  %s514_s26 = int_to_ptr.vmem [resolvable:$true] %s513_s26 }
  0x44   :  { %655 = vmatpush3.bf16.msra.mxu0 %v654_v59  ;;  %675 = vmatprep.subr.bf16.mxu1 %v843_v0  ;;  %v705_v59 = vpack.c.bf16 %v386_v56, %v384_v55  ;;  %s785_s27 = scalar_lea.vmem %s514_s26, 128  ;;  %p790_p3 = scmp.lt.s32.totalorder %s514_s26, %s514_s26 }
  0x45   :  { %657 = vmatprep.subr.bf16.mxu0 %v656_v60  ;;  %v707_v60 = vpack.c.bf16 %v391_v58, %v389_v57  ;;  %p786_p2 = scmp.ne.s32.totalorder %s514_s26, %s785_s27  ;;  %p791_p4 = scmp.lt.s32.totalorder %s785_s27, %s785_s27 }
  0x47   :  { %677 = vmatpush3.bf16.msra.mxu1 %v676_v4  ;;  %v392_v4 = vld [vmem:[#allocation5 + $0xc0] sm:$0xff]  ;;  %p792_p5 = por %p791_p4, %p790_p3 }
  0x48   :  { %659 = vmatpush3.bf16.msra.mxu0 %v658_v3  ;;  %678 = vmatprep.subr.bf16.mxu1 %v843_v0  ;;  %v711_v3 = vpack.c.bf16 %v395_v1, %v393_v63 }
  0x49   :  { %684 = vmatprep.subr.bf16.mxu0 %v843_v0  ;;  %p793_p6 = pnand %p792_p5, %p786_p2 }
  0x4b   :  { %173 = vmatmul.mubr.f32.vlgmr.msra.gmra.mrb[0].mxu0 %v67_v5  ;;  %680 = vmatpush3.bf16.msra.mxu1 %v679_v8  ;;  %v394_v5 = vld [vmem:[#allocation5 + $0xd0] sm:$0xff] }
  0x4c   :  { %681 = vmatprep.subr.bf16.mxu1 %v843_v0  ;;  %625 = vmatprep.mubr.msk.f32.mxu0 %vm844_vm0, %v845_v12  ;;  %v713_v6 = vpack.c.bf16 %v394_v5, %v392_v4 }
  0x4d   :  { %686 = vmatpush3.bf16.msra.mxu0 %v685_v25 }
  0x4f   :  { %683 = vmatpush3.bf16.msra.mxu1 %v682_v11  ;;  %v397_v11 = vld [vmem:[#allocation5 + $0xe8] sm:$0xff] }
  0x50   :  { %688 = vmatprep.subr.bf16.mxu1 %v687_v30 }
 0x11e   :  { %v563_v13 = vpop.f32.mrb[0].mxu0 }
 0x11f   :  { %v564_v0 = vpop.f32.mrb[1].mxu0 }
 0x120   :  { %v565_v15 = vadd.f32 %v564_v0, %v563_v13  ;;  %v398_v0 = vld [vmem:[#allocation5 + $0xf0] sm:$0xff] }
 0x122   :  { %v175_v16 = vadd.f32 %v565_v15, %v527_v14  ;;  %v396_v14 = vld [vmem:[#allocation5 + $0xe0] sm:$0xff] }
 0x123   :  { %v717_v15 = vpack.c.bf16 %v398_v0, %v396_v14 }
 0x124   :  { %v178_v17 = vmax.f32 %v175_v16, 0.0  ;;  %v529_v16 = vld [vmem:[%s1053_s7] ss:$0 sm:$0xff] }
 0x126   :  { %619 = vmatmul.mubr.f32.vlgmr.msra.gmra.mrb[0].mxu1 %v178_v17 }
 0x127   :  { %476 = vmatprep.mubr.f32.mxu1 %v845_v12  ;;  %690 = vmatpush1.bf16.msra.mxu1 %v689_v34  ;;  %v399_v12 = vld [vmem:[#allocation5 + $0xf8] sm:$0xff] }
 0x128   :  { %692 = vmatprep.subr.bf16.mxu1 %v691_v35  ;;  %v715_v13 = vpack.c.bf16 %v399_v12, %v397_v11 }
 0x12b   :  { %694 = vmatpush1.bf16.msra.mxu1 %v693_v40 }
 0x12c   :  { %696 = vmatprep.subr.bf16.mxu1 %v695_v41 }
 0x12f   :  { %698 = vmatpush1.bf16.msra.mxu1 %v697_v47 }
 0x130   :  { %700 = vmatprep.subr.bf16.mxu1 %v699_v48 }
 0x133   :  { %702 = vmatpush1.bf16.msra.mxu1 %v701_v53 }
 0x134   :  { %704 = vmatprep.subr.bf16.mxu1 %v703_v54 }
 0x137   :  { %706 = vmatpush1.bf16.msra.mxu1 %v705_v59 }
 0x138   :  { %708 = vmatprep.subr.bf16.mxu1 %v707_v60 }
 0x13b   :  { %710 = vmatpush1.bf16.msra.mxu1 %v709_v2 }
 0x13c   :  { %712 = vmatprep.subr.bf16.mxu1 %v711_v3 }
 0x13f   :  { %714 = vmatpush1.bf16.msra.mxu1 %v713_v6 }
 0x140   :  { %716 = vmatprep.subr.bf16.mxu1 %v715_v13 }
 0x143   :  { %718 = vmatpush1.bf16.msra.mxu1 %v717_v15 }
 0x1f9   :  { %v268_v19 = vpop.f32.mrb[0].mxu1 }
 0x1fa   :  { %v1002_v20 = vadd.f32 %v528_v18, %v268_v19  ;;  %v620_v21 = vpop.f32.mrb[1].mxu1 }
 0x1fc   :  { %v275_v22 = vmul.f32 0.5, %v1002_v20  ;;  %273 = vst.msk [vmem:[#allocation8] sm:$0xff] %vm272_vm1, %v1002_v20 }
 0x1fe   :  { %v276_v26 = vmul.f32 1.442695, %v275_v22 }
 0x200   :  { %731 = vpow2.f32 %v276_v26 }
 0x20a   :  { %v732_v46 = vpop.eup %731 }
 0x20b   :  { %279 = vrot.lane.b32.xlu0 %v732_v46, %s846_s5 }
 0x27d   :  { %v280_v8 = vpop.permute.xlu0 %279 }
 0x27e   :  { %v282_v9 = vmul.f32 %v280_v8, %v274_v7 }
 0x280   :  { %v283_v10 = vadd.f32 %v282_v9, %v1002_v20 }
 0x282   :  { %626 = vmatmul.mubr.msk.f32.vlgmr.msra.gmra.mrb[2].mxu0 %vm293_vm2, %v283_v10 }
 0x355   :  { %v363_v17 = vpop.f32.mrb[2].mxu0 }
 0x356   :  { %v364_v18 = vadd.f32 %v529_v16, %v363_v17  ;;  %v627_v19 = vpop.f32.mrb[3].mxu0 }
 0x358   :  { %v367_v21 = vmax.f32 %v364_v18, 0.0 }
 0x35a   :  { %477 = vmatmul.mubr.f32.vlgmr.msra.gmra.mrb[2].mxu1 %v367_v21 }
 0x35b   :  { %796 = shalt.err (!%p793_p6)
}
 0x35c   :  { %s797_s30 = scalar_lea.hbm %s1057_s11, 128 }
 0x35d   :  { %p798_p7 = scmp.ne.s32.totalorder %s1057_s11, %s797_s30  ;;  %p801_p8 = scmp.lt.u32.totalorder %s797_s30, %s1057_s11 }
 0x35f   :  { %p803_p9 = pnand %p801_p8, %p798_p7 }
 0x361   :  { %806 = shalt.err (!%p803_p9)
}
 0x362   :  { %516 = dma.vmem_to_hbm [thread:$0]  %s514_s26, 128, %s1057_s11, [#allocation9]   ;;  %v402_v20 = vlaneseq  ;;  %v400_v24 = vld [vmem:[%s1055_s9] sm:$0x3] }
 0x363   :  { %s848_s9 = smov [#allocation7]  }
 0x364   :  { %v403_v22 = vshrl.u32 %v402_v20, 7  ;;  %s503_s11 = sshll.u32 %s848_s9, 4  ;;  %s504_s11 = int_to_ptr.vmem [resolvable:$true] %s503_s11 }
 0x365   :  { %s807_s19 = scalar_lea.vmem %s504_s11, 256  ;;  %p812_p11 = scmp.lt.s32.totalorder %s504_s11, %s504_s11 }
 0x366   :  { %v404_v23 = vsub.s32 0, %v403_v22  ;;  %v408_v25 = vsub.s32 1, %v403_v22  ;;  %p808_p10 = scmp.ne.s32.totalorder %s504_s11, %s807_s19  ;;  %p813_p12 = scmp.lt.s32.totalorder %s807_s19, %s807_s19 }
 0x368   :  { %v405_v26 = vrot.slane %v400_v24, %v404_v23  ;;  %v409_v27 = vrot.slane %v400_v24, %v408_v25  ;;  %p814_p13 = por %p813_p12, %p812_p11 }
 0x36a   :  { %p815_p0 = pnand %p814_p13, %p808_p10 }
 0x42d   :  { %v478_v28 = vpop.f32.mrb[2].mxu1 }
 0x42e   :  { %v479_v29 = vadd.f32 %v478_v28, %v405_v26  ;;  %v480_v30 = vpop.f32.mrb[3].mxu1 }
 0x42f   :  { %v481_v31 = vadd.f32 %v480_v30, %v409_v27 }
 0x430   :  { %v483_v32 = vsub.f32 0.0, %v479_v29 }
 0x431   :  { %v484_v33 = vsub.f32 0.0, %v481_v31 }
 0x432   :  { %v485_v34 = vmul.f32 1.442695, %v483_v32 }
 0x433   :  { %v487_v35 = vmul.f32 1.442695, %v484_v33 }
 0x434   :  { %733 = vpow2.f32 %v485_v34 }
 0x435   :  { %735 = vpow2.f32 %v487_v35 }
 0x43e   :  { %v734_v36 = vpop.eup %733 }
 0x43f   :  { %v736_v37 = vpop.eup %735  ;;  %v489_v38 = vadd.f32 1.0, %v734_v36 }
 0x440   :  { %v490_v39 = vadd.f32 1.0, %v736_v37 }
 0x441   :  { %737 = vrcp.f32 %v489_v38 }
 0x442   :  { %739 = vrcp.f32 %v490_v39 }
 0x44b   :  { %v738_v40 = vpop.eup %737 }
 0x44c   :  { %v740_v41 = vpop.eup %739  ;;  %495 = vst [vmem:[#allocation7] sm:$0xff] %v738_v40 }
 0x44d   :  { %496 = vst [vmem:[#allocation7 + $0x8] sm:$0xff] %v740_v41 }
 0x44e   :  { %818 = shalt.err (!%p815_p0)
}
 0x44f   :  { %s819_s22 = scalar_lea.hbm %s1056_s10, 256 }
 0x450   :  { %p820_p1 = scmp.ne.s32.totalorder %s1056_s10, %s819_s22  ;;  %p823_p2 = scmp.lt.u32.totalorder %s819_s22, %s1056_s10 }
 0x452   :  { %p825_p3 = pnand %p823_p2, %p820_p1 }
 0x454   :  { %828 = shalt.err (!%p825_p3)
}
 0x455   :  { %506 = dma.vmem_to_hbm [thread:$0]  %s504_s11, 256, %s1056_s10, [#allocation4]  }
 0x456   :  { %833 = dma.done.wait [#allocation4], 256  }
 0x457   :  { %834 = vsyncadd [#allocation4], 4294967040 }
 0x458   :  { %835 = dma.done.wait [#allocation9], 128  }
 0x459   :  { %836 = vsyncadd [#allocation9], 4294967168 }
 0x45a   :  { %523 = vsyncpa [#allocation3], 1 }
 0x45b   :  { %524 = vsyncpa [#allocation6], 1 }
 0x45c   :  { %525 = vsyncpa [#allocation4], 1 }
 0x45d   :  { %526 = vsyncpa [#allocation9], 1 }

</bundles_post_ra>
